<compile_context>
chip_gen: v7x
topology: tpu7x:2x2x1
jax: 0.10.0
libtpu: 0.0.40
codegen_flags: <defaults>
</compile_context>

<pallas_src>
import jax
import jax.numpy as jnp
import numpy as np
from jax import lax
from jax.experimental import pallas as pl
from jax.experimental.pallas import tpu as pltpu


def _unitmanhattan_kernel(posnum_ref, xi_ref, xj_ref, sqi_ref, sqj_ref, o_ref):
    # Scalar prep (SMEM, once per tile).
    inv = 1.0 / (posnum_ref[0] + 1e-40)
    inv2 = inv * inv

    # Fold 1/posnum and the Gram-identity -2 into the skinny operands (O(T*D) work).
    xi = xi_ref[...].astype(jnp.float32) * (-2.0 * inv)        # (TM, D)
    xj = xj_ref[...].astype(jnp.float32) * inv                 # (TN, D)
    TM, TN = xi.shape[0], xj.shape[0]

    # gram_neg = -2 * inv^2 * <xi_raw, xj_raw>; contract last dim of both (no transpose).
    gram_neg = lax.dot_general(
        xi, xj,
        dimension_numbers=(((1,), (1,)), ((), ())),
        preferred_element_type=jnp.float32)                    # (TM, TN)

    # Row squared norms from the wrapper prepass; scale by inv^2 (tiny (TM,1)/(1,TN) ops).
    sq_i = sqi_ref[...].astype(jnp.float32) * inv2             # (TM, 1)
    sq_j = sqj_ref[...].astype(jnp.float32) * inv2             # (1, TN)

    d2 = jnp.maximum(sq_i + sq_j + gram_neg, 0.0)              # (norm/posnum)^2
    out = jnp.maximum(0.0, 1.0 - jnp.sqrt(d2))

    # Global diagonal is exactly 1 (zero distance); the Gram identity cancels there,
    # so patch it -- but only on tiles that actually intersect the diagonal.
    row0 = pl.program_id(1) * TM
    col0 = pl.program_id(2) * TN
    intersects = jnp.logical_and(row0 < col0 + TN, col0 < row0 + TM)

    @pl.when(jnp.logical_not(intersects))
    def _():
        o_ref[...] = out.astype(o_ref.dtype)

    @pl.when(intersects)
    def _():
        row_ids = row0 + lax.broadcasted_iota(jnp.int32, (TM, TN), 0)
        col_ids = col0 + lax.broadcasted_iota(jnp.int32, (TM, TN), 1)
        o_ref[...] = jnp.where(row_ids == col_ids, 1.0, out).astype(o_ref.dtype)


def _pick_tile(n_pad, d, budget_bytes=10 * 1024 * 1024):
    """Largest lane-aligned tile dividing n_pad whose double-buffered f32 footprint
    (row block + col block + output tile + norm vectors) fits a conservative VMEM
    budget (safe on v5e's ~16 MiB default scoped window and v7x's 64 MiB VMEM)."""
    for c in (512, 256, 128):
        if n_pad % c != 0:
            continue
        est = 2 * 4 * (2 * c * d + c * c + 2 * c)   # double-buffered f32 bytes
        if est <= budget_bytes:
            return c
    # TODO(synk): for very large D, add a K grid axis ("arbitrary") with an f32
    # accumulator scratch instead of loading the full feature dim per tile.
    return 128


def unitmanhattan_forward(vct, posnum):
    """vct: (..., N, D); posnum: shape-(1,) float32 (ori_kernel_fish_posnum)."""
    *lead, N, D = vct.shape
    B = 1
    for s in lead:
        B *= s
    x = vct.reshape(B, N, D)

    # Pad N to a multiple of 128 so output stores are lane-dense (unmasked vst).
    Np = max(128, ((N + 127) // 128) * 128)
    if Np != N:
        x = jnp.pad(x, ((0, 0), (0, Np - N), (0, 0)))

    # Row squared-norm prepass: O(B*N*D), negligible vs the O(B*N^2) output.
    xf = x.astype(jnp.float32)
    sqn = jnp.sum(xf * xf, axis=-1)                            # (B, Np)
    sq_col = sqn[:, :, None]                                   # (B, Np, 1)
    sq_row = sqn[:, None, :]                                   # (B, 1, Np)

    TM = _pick_tile(Np, D)
    # v7x has 2 TensorCores: keep the parallel grid splittable into >= 2 slices.
    while B * (Np // TM) < 2 and TM > 128:
        TM //= 2
    TN = _pick_tile(Np, D)

    grid = (B, Np // TM, Np // TN)   # j innermost -> row block resident across j sweep

    out = pl.pallas_call(
        _unitmanhattan_kernel,
        out_shape=jax.ShapeDtypeStruct((B, Np, Np), vct.dtype),
        grid=grid,
        in_specs=[
            pl.BlockSpec(memory_space=pltpu.MemorySpace.SMEM),         # posnum (1,)
            pl.BlockSpec((None, TM, D), lambda b, i, j: (b, i, 0)),    # row block (j-resident)
            pl.BlockSpec((None, TN, D), lambda b, i, j: (b, j, 0)),    # column block
            pl.BlockSpec((None, TM, 1), lambda b, i, j: (b, i, 0)),    # ||x_i||^2
            pl.BlockSpec((None, 1, TN), lambda b, i, j: (b, 0, j)),    # ||x_j||^2
        ],
        out_specs=pl.BlockSpec((None, TM, TN), lambda b, i, j: (b, i, j)),
        compiler_params=pltpu.CompilerParams(
            dimension_semantics=("parallel", "parallel", "parallel")),
    )(posnum, x, x, sq_col, sq_row)

    out = out[:, :N, :N]
    return out.reshape(*lead, N, N)


if __name__ == "__main__":
    # Module __init__: ori_kernel_fish_posnum initialized to 1.2.
    posnum = jnp.array([1.2], dtype=jnp.float32)

    key = jax.random.PRNGKey(0)
    k1, k2 = jax.random.split(key)

    def reference(v, p):
        diff = v[..., :, None, :] - v[..., None, :, :]
        norm = jnp.sqrt(jnp.sum(diff.astype(jnp.float32) ** 2, axis=-1))
        return jnp.maximum(0.0, 1.0 - norm / (p[0] + 1e-40))

    # Case 1: lane-dense (B, N, D) = (2, 128, 32).
    vct1 = 0.1 * jax.random.normal(k1, (2, 128, 32), dtype=jnp.float32)
    out1 = jax.block_until_ready(unitmanhattan_forward(vct1, posnum))
    np.testing.assert_allclose(np.asarray(out1), np.asarray(reference(vct1, posnum)),
                               rtol=1e-4, atol=1e-4)

    # Case 2: N not a multiple of 128 (exercises the pad + slice-back path).
    vct2 = 0.1 * jax.random.normal(k2, (1, 80, 16), dtype=jnp.float32)
    out2 = jax.block_until_ready(unitmanhattan_forward(vct2, posnum))
    np.testing.assert_allclose(np.asarray(out2), np.asarray(reference(vct2, posnum)),
                               rtol=1e-4, atol=1e-4)

    print("KERNEL_OK")
</pallas_src>

<mosaic_0001>
module attributes {stable_mosaic.version = 11 : i64} {
  func.func @_unitmanhattan_kernel(%arg0: i32, %arg1: i32, %arg2: i32, %arg3: memref<1xf32, #tpu.memory_space<smem>>, %arg4: memref<1x128x32xf32, #tpu.memory_space<vmem>>, %arg5: memref<1x128x32xf32, #tpu.memory_space<vmem>>, %arg6: memref<1x128x1xf32, #tpu.memory_space<vmem>>, %arg7: memref<1x1x128xf32, #tpu.memory_space<vmem>>, %arg8: memref<1x128x128xf32, #tpu.memory_space<vmem>>) attributes {dimension_semantics = [#tpu.dimension_semantics<parallel>, #tpu.dimension_semantics<parallel>, #tpu.dimension_semantics<parallel>], iteration_bounds = array<i64: 2, 1, 1>, scalar_prefetch = 0 : i64, scratch_operands = 0 : i64, tpu.core_type = #tpu.core_type<tc>, window_params = [{transform_indices = @transform_0, window_bounds = array<i64: 1>}, {transform_indices = @transform_1, window_bounds = array<i64: 1, 128, 32>}, {transform_indices = @transform_2, window_bounds = array<i64: 1, 128, 32>}, {transform_indices = @transform_3, window_bounds = array<i64: 1, 128, 1>}, {transform_indices = @transform_4, window_bounds = array<i64: 1, 1, 128>}, {transform_indices = @transform_5, window_bounds = array<i64: 1, 128, 128>}]} {
    %c0 = arith.constant 0 : index
    %0 = memref.load %arg3[%c0] : memref<1xf32, #tpu.memory_space<smem>>
    %cst = arith.constant 9.999940e-41 : f32
    %1 = arith.addf %0, %cst : f32
    %cst_0 = arith.constant 1.000000e+00 : f32
    %2 = arith.divf %cst_0, %1 : f32
    %3 = arith.mulf %2, %2 : f32
    %c0_1 = arith.constant 0 : index
    %c0_2 = arith.constant 0 : index
    %c0_3 = arith.constant 0 : index
    %4 = vector.load %arg4[%c0_1, %c0_2, %c0_3] : memref<1x128x32xf32, #tpu.memory_space<vmem>>, vector<1x128x32xf32>
    %5 = vector.shape_cast %4 : vector<1x128x32xf32> to vector<128x32xf32>
    %cst_4 = arith.constant -2.000000e+00 : f32
    %6 = arith.mulf %cst_4, %2 : f32
    %7 = vector.broadcast %6 : f32 to vector<128x32xf32>
    %8 = arith.mulf %5, %7 : vector<128x32xf32>
    %c0_5 = arith.constant 0 : index
    %c0_6 = arith.constant 0 : index
    %c0_7 = arith.constant 0 : index
    %9 = vector.load %arg5[%c0_5, %c0_6, %c0_7] : memref<1x128x32xf32, #tpu.memory_space<vmem>>, vector<1x128x32xf32>
    %10 = vector.shape_cast %9 : vector<1x128x32xf32> to vector<128x32xf32>
    %11 = vector.broadcast %2 : f32 to vector<128x32xf32>
    %12 = arith.mulf %10, %11 : vector<128x32xf32>
    %cst_8 = arith.constant dense<0.000000e+00> : vector<128x128xf32>
    %13 = tpu.matmul %8, %12, %cst_8 {dimension_numbers = #tpu.dot_dimension_numbers<[1], [1], [0], [0], [0, 0, 1, 0], [], []>} : vector<128x32xf32>, vector<128x32xf32>, vector<128x128xf32> -> vector<128x128xf32>
    %c0_9 = arith.constant 0 : index
    %c0_10 = arith.constant 0 : index
    %c0_11 = arith.constant 0 : index
    %14 = vector.load %arg6[%c0_9, %c0_10, %c0_11] : memref<1x128x1xf32, #tpu.memory_space<vmem>>, vector<1x128x1xf32>
    %15 = vector.shape_cast %14 : vector<1x128x1xf32> to vector<128x1xf32>
    %16 = vector.broadcast %3 : f32 to vector<128x1xf32>
    %17 = arith.mulf %15, %16 : vector<128x1xf32>
    %c0_12 = arith.constant 0 : index
    %c0_13 = arith.constant 0 : index
    %c0_14 = arith.constant 0 : index
    %18 = vector.load %arg7[%c0_12, %c0_13, %c0_14] : memref<1x1x128xf32, #tpu.memory_space<vmem>>, vector<1x1x128xf32>
    %19 = vector.shape_cast %18 : vector<1x1x128xf32> to vector<1x128xf32>
    %20 = vector.broadcast %3 : f32 to vector<1x128xf32>
    %21 = arith.mulf %19, %20 : vector<1x128xf32>
    %22 = vector.broadcast %17 : vector<128x1xf32> to vector<128x128xf32>
    %23 = vector.broadcast %21 : vector<1x128xf32> to vector<128x128xf32>
    %24 = arith.addf %22, %23 : vector<128x128xf32>
    %25 = arith.addf %24, %13 : vector<128x128xf32>
    %cst_15 = arith.constant 0.000000e+00 : f32
    %26 = vector.broadcast %cst_15 : f32 to vector<128x128xf32>
    %27 = arith.maximumf %25, %26 : vector<128x128xf32>
    %28 = math.sqrt %27 : vector<128x128xf32>
    %cst_16 = arith.constant 1.000000e+00 : f32
    %29 = vector.broadcast %cst_16 : f32 to vector<128x128xf32>
    %30 = arith.subf %29, %28 : vector<128x128xf32>
    %cst_17 = arith.constant 0.000000e+00 : f32
    %31 = vector.broadcast %cst_17 : f32 to vector<128x128xf32>
    %32 = arith.maximumf %31, %30 : vector<128x128xf32>
    %c128_i32 = arith.constant 128 : i32
    %33 = arith.muli %arg1, %c128_i32 : i32
    %c128_i32_18 = arith.constant 128 : i32
    %34 = arith.muli %arg2, %c128_i32_18 : i32
    %c128_i32_19 = arith.constant 128 : i32
    %35 = arith.addi %34, %c128_i32_19 : i32
    %36 = arith.cmpi slt, %33, %35 : i32
    %c128_i32_20 = arith.constant 128 : i32
    %37 = arith.addi %33, %c128_i32_20 : i32
    %38 = arith.cmpi slt, %34, %37 : i32
    %39 = arith.andi %36, %38 : i1
    %true = arith.constant true
    %40 = arith.xori %39, %true : i1
    %41 = arith.extui %40 : i1 to i32
    %c0_i32 = arith.constant 0 : i32
    %42 = arith.cmpi ne, %41, %c0_i32 : i32
    scf.if %42 {
      %c0_22 = arith.constant 0 : index
      %c0_23 = arith.constant 0 : index
      %c0_24 = arith.constant 0 : index
      %45 = vector.load %arg8[%c0_22, %c0_23, %c0_24] : memref<1x128x128xf32, #tpu.memory_space<vmem>>, vector<1x128x128xf32>
      %46 = vector.shape_cast %45 : vector<1x128x128xf32> to vector<128x128xf32>
      %47 = vector.shape_cast %32 : vector<128x128xf32> to vector<1x128x128xf32>
      tpu.vector_store %arg8[%c0_22, %c0_23, %c0_24], %47 {strides = array<i32>} : memref<1x128x128xf32, #tpu.memory_space<vmem>>, vector<1x128x128xf32>,
    } else {
    }
    %43 = arith.extui %39 : i1 to i32
    %c0_i32_21 = arith.constant 0 : i32
    %44 = arith.cmpi ne, %43, %c0_i32_21 : i32
    scf.if %44 {
      %45 = tpu.iota {dimensions = array<i32: 0>} : vector<128x128xi32>
      %46 = vector.broadcast %33 : i32 to vector<128x128xi32>
      %47 = arith.addi %46, %45 : vector<128x128xi32>
      %48 = tpu.iota {dimensions = array<i32: 1>} : vector<128x128xi32>
      %49 = vector.broadcast %34 : i32 to vector<128x128xi32>
      %50 = arith.addi %49, %48 : vector<128x128xi32>
      %51 = arith.cmpi eq, %47, %50 : vector<128x128xi32>
      %cst_22 = arith.constant 1.000000e+00 : f32
      %52 = vector.broadcast %cst_22 : f32 to vector<128x128xf32>
      %53 = arith.select %51, %52, %32 : vector<128x128xi1>, vector<128x128xf32>
      %c0_23 = arith.constant 0 : index
      %c0_24 = arith.constant 0 : index
      %c0_25 = arith.constant 0 : index
      %54 = vector.load %arg8[%c0_23, %c0_24, %c0_25] : memref<1x128x128xf32, #tpu.memory_space<vmem>>, vector<1x128x128xf32>
      %55 = vector.shape_cast %54 : vector<1x128x128xf32> to vector<128x128xf32>
      %56 = vector.shape_cast %53 : vector<128x128xf32> to vector<1x128x128xf32>
      tpu.vector_store %arg8[%c0_23, %c0_24, %c0_25], %56 {strides = array<i32>} : memref<1x128x128xf32, #tpu.memory_space<vmem>>, vector<1x128x128xf32>,
    } else {
    }
    return
  }
  func.func @transform_0(%arg0: i32, %arg1: i32, %arg2: i32) -> i32 {
    %c0_i32 = arith.constant 0 : i32
    %c0_i32_0 = arith.constant 0 : i32
    return %c0_i32 : i32
  }
  func.func @transform_1(%arg0: i32, %arg1: i32, %arg2: i32) -> (i32, i32, i32) {
    %c0_i32 = arith.constant 0 : i32
    %c0_i32_0 = arith.constant 0 : i32
    return %arg0, %arg1, %c0_i32 : i32, i32, i32
  }
  func.func @transform_2(%arg0: i32, %arg1: i32, %arg2: i32) -> (i32, i32, i32) {
    %c0_i32 = arith.constant 0 : i32
    %c0_i32_0 = arith.constant 0 : i32
    return %arg0, %arg2, %c0_i32 : i32, i32, i32
  }
  func.func @transform_3(%arg0: i32, %arg1: i32, %arg2: i32) -> (i32, i32, i32) {
    %c0_i32 = arith.constant 0 : i32
    %c0_i32_0 = arith.constant 0 : i32
    return %arg0, %arg1, %c0_i32 : i32, i32, i32
  }
  func.func @transform_4(%arg0: i32, %arg1: i32, %arg2: i32) -> (i32, i32, i32) {
    %c0_i32 = arith.constant 0 : i32
    %c0_i32_0 = arith.constant 0 : i32
    return %arg0, %c0_i32, %arg2 : i32, i32, i32
  }
  func.func @transform_5(%arg0: i32, %arg1: i32, %arg2: i32) -> (i32, i32, i32) {
    %c0_i32 = arith.constant 0 : i32
    return %arg0, %arg1, %arg2 : i32, i32, i32
  }
}

</mosaic_0001>

<bundles_post_ra>
// kernel: tpu_custom_call.1
= control target key start
LH: loop header
LB: loop body
LE: loop exit
PB: predicated region body
PF: predicated region fallthrough
CT: control target
= control target key end

     0   :  { %s2339_s0 = inlined_call_operand.<no memory space> [shape: f32[1], index: 0, kind: input, shape index: {}]   ;;  %s2340_s1 = inlined_call_operand.vmem [shape: f32[2,128,32], index: 1, kind: input, shape index: {}]   ;;  %s2341_s2 = inlined_call_operand.vmem [shape: f32[2,128,32], index: 2, kind: input, shape index: {}]   ;;  %s2342_s3 = inlined_call_operand.vmem [shape: f32[2,128,1], index: 3, kind: input, shape index: {}]   ;;  %s2343_s4 = inlined_call_operand.vmem [shape: f32[2,1,128], index: 4, kind: input, shape index: {}]   ;;  %s2344_s5 = inlined_call_operand.hbm [shape: f32[2,128,128], index: 5, kind: output, shape index: {}]  }
   0x1   :  { %10 = sst [smem:[#allocation2]] %s2339_s0 }
   0x2   :  { %11 = vsyncpa [#allocation4], 0 }
   0x3   :  { %13 = vsyncpa [#allocation4 + $0x1], 0  ;;  %s1670_s20 = smov 0   ;;  %s1672_s21 = smov 0  }
   0x4   :  { %s1674_s22 = smov 0   ;;  %s1676_s23 = smov 0  }
   0x5   :  { %s1678_s24 = smov 0   ;;  %s1680_s25 = smov 0  }
   0x6 LB: > { %s1252_s0 = sadd.s32 4294967295, %s1631_s25   ;;  %s1253_s26 = sadd.s32 4294967294, %s1631_s25   ;;  %s1631_s25 = sphi %s1680_s25, %s19_s25   ;;  %s1627_s24 = sphi %s1678_s24, %s2357_s24   ;;  %s1623_s23 = sphi %s1676_s23, %s2356_s23   ;;  %s1619_s22 = sphi %s1674_s22, %s2355_s22   ;;  %s1615_s21 = sphi %s1672_s21, %s2354_s21   ;;  %s1611_s20 = sphi %s1670_s20, %s2353_s20  }
   0x7   : > { %s38_s27 = sadd.s32 1, %s1627_s24  ;;  %s182_s28 = sadd.s32 1, %s1619_s22 }
   0x8   : > { %p40_p0 = scmp.ge.s32.totalorder %s38_s27, 2  ;;  %p192_p1 = scmp.ne.s32.totalorder %s1619_s22, %s1615_s21 }
   0x9   : > { %p193_p2 = scmp.eq.s32.totalorder %s1252_s0, 1  ;;  %p198_p3 = scmp.ne.s32.totalorder %s1615_s21, %s1611_s20 }
   0xa   : > { %s2359_s27 = smov (%p40_p0, %s38_s27), 0  ;;  %p199_p5 = scmp.eq.s32.totalorder %s1253_s26, 1 }
   0xb   : > { %p1710_p4 = por %p193_p2, %p192_p1  ;;  %s175_s30 = ssub.s32 %s1627_s24, %s2359_s27 }
   0xc   : > { %p1256_p6 = scmp.ge.s32.totalorder %s1631_s25, 1  ;;  %p180_p7 = scmp.eq.s32.totalorder %s175_s30, 0 }
   0xd   : > { %p1717_p8 = por %p199_p5, %p198_p3  ;;  %p268_p9 = scmp.lt.s32.totalorder %s1631_s25, 3 }
   0xe   : > { %s1723_s7 = scalar_select %p180_p7, %s1619_s22, %s182_s28  }
   0xf   : > { %p269_p10 = pnand %p1256_p6, %p268_p9 }
  0x10   : > { %s361_s8 = sld [smem:[#allocation2]] (!%p269_p10)  ;;  %v1633_v0 = vmov (!%p269_p10), 0   ;;  %p325_p11 = scmp.lt.s32.totalorder (!%p269_p10), %s1623_s23, 1  ;;  %vm434_vm0 = vcmask (!%p269_p10), 261120  }
  0x11   : > { %272 = sbr.rel (%p269_p10) target bundleno = 445 (0x1bd), region = 40  ;;  %1518 = vset.pattern.permute.xlu1 (!%p269_p10), %v1633_v0  ;;  %1517 = vset.pattern.permute.xlu0 (!%p269_p10), %v1633_v0  ;;  %vm1770_vm1 = vmpackc.low (!%p269_p10), %vm434_vm0, %vm434_vm0 }
  0x16   : > { %v363_v1 = vstv (!%p269_p10), %s361_s8 }
  0x17   : > { %1519 = vrcp.f32 (!%p269_p10), %v363_v1 }
  0x18   : > { %s326_s9 = scalar_select %p325_p11, %s1623_s23, 1 }
  0x1a   : > { %s1301_s10 = sshll.u32 %s326_s9, 7  ;;  %s359_s19 = scalar_lea.vmem %s2343_s4, %s326_s9 }
  0x1b   : > { %s1730_s13 = scalar_lea.vmem %s2341_s2, %s1301_s10  ;;  %s1735_s16 = scalar_lea.vmem %s2342_s3, %s1301_s10  ;;  %v709_v9 = vld [vmem:[%s359_s19] sm:$0x1] }
  0x1c   : > { %v401_v3 = vld [vmem:[%s1730_s13] sm:$0xff]  ;;  %v402_v4 = vld [vmem:[%s1730_s13 + $0x8] sm:$0xff]  ;;  %s1745_s28 = scalar_lea.vmem %s2340_s1, %s1301_s10  ;;  %v403_v5 = vld [vmem:[%s1730_s13 + $0x10] sm:$0xff]  ;;  %s321_s10 = sand.u32 1, %s1615_s21  }
  0x1d   : > { %v404_v6 = vld [vmem:[%s1730_s13 + $0x18] sm:$0xff]  ;;  %v678_v8 = vld [vmem:[%s1735_s16 + $0x10] sm:$0xff]  ;;  %v676_v10 = vld [vmem:[%s1735_s16] sm:$0xff]  ;;  %s2101_s11 = sshll.u32 %s321_s10, 7  ;;  %s2293_s17 = scalar_lea.sflag [#allocation4], %s321_s10 }
  0x1e   : > { %v367_v13 = vld [vmem:[%s1745_s28] sm:$0xff]  ;;  %v679_v26 = vld [vmem:[%s1735_s16 + $0x18] sm:$0xff]  ;;  %v677_v27 = vld [vmem:[%s1735_s16 + $0x8] sm:$0xff]  ;;  %s2146_s12 = scalar_lea.vmem [#allocation3], %s2101_s11  ;;  %s1634_s19 = smov [#allocation3]  }
  0x1f   : > { %v375_v14 = vld [vmem:[%s1745_s28 + $0x40] sm:$0xff]  ;;  %v406_v29 = vld [vmem:[%s1730_s13 + $0x28] sm:$0xff]  ;;  %v683_v37 = vld [vmem:[%s1735_s16 + $0x38] sm:$0xff]  ;;  %s1121_s14 = sshll.u32 %s2146_s12, 4  ;;  %s1557_s0 = sshll.u32 %s1634_s19, 4  ;;  %s2286_s14 = int_to_ptr.vmem [resolvable:$true] %s1121_s14  ;;  %s1558_s0 = int_to_ptr.vmem [resolvable:$false] %s1557_s0 }
  0x20   : > { %v405_v28 = vld [vmem:[%s1730_s13 + $0x20] sm:$0xff]  ;;  %v681_v33 = vld [vmem:[%s1735_s16 + $0x28] sm:$0xff]  ;;  %v682_v40 = vld [vmem:[%s1735_s16 + $0x30] sm:$0xff]  ;;  %s1553_s18 = scalar_lea.vmem %s2286_s14, 2048  ;;  %s1559_s26 = scalar_lea.vmem %s1558_s0, 4096 }
  0x21   : > { %v1520_v2 = vpop.eup %1519  ;;  %v680_v34 = vld [vmem:[%s1735_s16 + $0x20] sm:$0xff]  ;;  %v368_v38 = vld [vmem:[%s1745_s28 + $0x8] sm:$0xff]  ;;  %v369_v41 = vld [vmem:[%s1745_s28 + $0x10] sm:$0xff]  ;;  %p1554_p12 = scmp.ne.s32.totalorder %s2286_s14, %s1553_s18  ;;  %p1560_p1 = scmp.lt.s32.totalorder %s2286_s14, %s1558_s0 }
  0x22   : > { %1457 = vpush %v1520_v2  ;;  %v376_v39 = vld [vmem:[%s1745_s28 + $0x48] sm:$0xff]  ;;  %v377_v42 = vld [vmem:[%s1745_s28 + $0x50] sm:$0xff]  ;;  %v370_v45 = vld [vmem:[%s1745_s28 + $0x18] sm:$0xff]  ;;  %p1561_p2 = scmp.lt.s32.totalorder %s1559_s26, %s1553_s18 }
  0x23   : > { %v378_v46 = vld [vmem:[%s1745_s28 + $0x58] sm:$0xff]  ;;  %v371_v47 = vld [vmem:[%s1745_s28 + $0x20] sm:$0xff]  ;;  %v372_v52 = vld [vmem:[%s1745_s28 + $0x28] sm:$0xff]  ;;  %p1555_p13 = pnand %p1554_p12, %p1710_p4 }
  0x24   : > { %v379_v51 = vld [vmem:[%s1745_s28 + $0x60] sm:$0xff]  ;;  %v380_v53 = vld [vmem:[%s1745_s28 + $0x68] sm:$0xff]  ;;  %v373_v57 = vld [vmem:[%s1745_s28 + $0x30] sm:$0xff]  ;;  %p1562_p3 = por %p1561_p2, %p1560_p1 }
  0x25   : > { %v381_v58 = vld [vmem:[%s1745_s28 + $0x70] sm:$0xff]  ;;  %v374_v59 = vld [vmem:[%s1745_s28 + $0x38] sm:$0xff]  ;;  %p1556_p0 = pneg %p1555_p13 }
  0x26   : > { %v382_v0 = vld [vmem:[%s1745_s28 + $0x78] sm:$0xff]  ;;  %v407_v1 = vld [vmem:[%s1730_s13 + $0x30] sm:$0xff] }
  0x27   : > { %v408_v2 = vld [vmem:[%s1730_s13 + $0x38] sm:$0xff]  ;;  %p1563_p5 = pnand %p1562_p3, %p1556_p0 }
  0x53   : > { %s1458_s30 = spop %1457 }
  0x54   : > { %s366_s8 = smul.f32 %s1458_s30, %s1458_s30  ;;  %v1749_v7 = vstv %s1458_s30 }
  0x55   : > { %s383_s9 = smul.f32 -2.0, %s1458_s30  ;;  %v418_v11 = vmul.f32 %v1749_v7, %v401_v3  ;;  %v419_v12 = vmul.f32 %v1749_v7, %v402_v4  ;;  %v420_v16 = vmul.f32 %v1749_v7, %v403_v5  ;;  %v421_v17 = vmul.f32 %v1749_v7, %v404_v6  ;;  %v685_v6 = vld [vmem:[%s1735_s16 + $0x48] sm:$0xff] }
  0x56   : > { %v1757_v15 = vstv %s366_s8  ;;  %v422_v35 = vmul.f32 %v1749_v7, %v405_v28  ;;  %v423_v36 = vmul.f32 %v1749_v7, %v406_v29  ;;  %v688_v28 = vld [vmem:[%s1735_s16 + $0x60] sm:$0xff] }
  0x57   : > { %v1761_v18 = vstv %s383_s9  ;;  %v695_v19 = vmul.f32 %v1757_v15, %v678_v8  ;;  %v1765_v20 = vmul.f32 %v709_v9, %v1757_v15  ;;  %v693_v21 = vmul.f32 %v1757_v15, %v676_v10  ;;  %v684_v8 = vld [vmem:[%s1735_s16 + $0x40] sm:$0xff] }
  0x58   : > { %v1393_v23 = vpack.c.bf16 %v419_v12, %v418_v11  ;;  %v385_v24 = vmul.f32 %v1761_v18, %v367_v13  ;;  %v393_v25 = vmul.f32 %v1761_v18, %v375_v14  ;;  %v1399_v30 = vpack.c.bf16 %v421_v17, %v420_v16 }
  0x59   : > { %723 = vperm.xlu1 %1518, %v695_v19   ;;  %713 = vperm.xlu0 %1517, %v693_v21   ;;  %v696_v31 = vmul.f32 %v1757_v15, %v679_v26  ;;  %v694_v32 = vmul.f32 %v1757_v15, %v677_v27  ;;  %v698_v43 = vmul.f32 %v1757_v15, %v681_v33  ;;  %v687_v19 = vld [vmem:[%s1735_s16 + $0x58] sm:$0xff]  ;;  %v686_v21 = vld [vmem:[%s1735_s16 + $0x50] sm:$0xff]  ;;  %v410_v26 = vld [vmem:[%s1730_s13 + $0x48] sm:$0xff] }
  0x5a   : > { %1395 = vmatprep.subr.msk.bf16.mxu0 %vm1770_vm1, %v1393_v23  ;;  %1441 = vmatprep.subr.msk.bf16.mxu1 %vm1770_vm1, %v1393_v23  ;;  %v697_v44 = vmul.f32 %v1757_v15, %v680_v34  ;;  %v1405_v48 = vpack.c.bf16 %v423_v36, %v422_v35  ;;  %v1812_v49 = vmul.f32 %v1761_v18, %v368_v38  ;;  %v689_v27 = vld [vmem:[%s1735_s16 + $0x68] sm:$0xff]  ;;  %v691_v33 = vld [vmem:[%s1735_s16 + $0x78] sm:$0xff]  ;;  %v690_v34 = vld [vmem:[%s1735_s16 + $0x70] sm:$0xff] }
  0x5b   : > { %1369 = vmatprep.mubr.msk.f32.mxu0 %vm434_vm0, %v385_v24  ;;  %1381 = vmatprep.mubr.msk.f32.mxu1 %vm434_vm0, %v393_v25  ;;  %v1815_v50 = vmul.f32 %v1761_v18, %v376_v39  ;;  %v700_v54 = vmul.f32 %v1757_v15, %v683_v37  ;;  %v1822_v55 = vmul.f32 %v1761_v18, %v369_v41  ;;  %v409_v25 = vld [vmem:[%s1730_s13 + $0x40] sm:$0xff]  ;;  %v411_v38 = vld [vmem:[%s1730_s13 + $0x50] sm:$0xff]  ;;  %v412_v39 = vld [vmem:[%s1730_s13 + $0x58] sm:$0xff] }
  0x5c   : > { %1398 = vmatpush3.bf16.xpose.msk.msra.mxu0 %vm1770_vm1, %v1393_v23  ;;  %1449 = vmatpush3.bf16.xpose.msk.msra.mxu1 %vm1770_vm1, %v1393_v23  ;;  %v1825_v56 = vmul.f32 %v1761_v18, %v377_v42  ;;  %v699_v60 = vmul.f32 %v1757_v15, %v682_v40  ;;  %v1832_v61 = vmul.f32 %v1761_v18, %v370_v45 }
  0x5d   : > { %1401 = vmatprep.subr.msk.bf16.mxu0 %vm1770_vm1, %v1399_v30  ;;  %1442 = vmatprep.subr.msk.bf16.mxu1 %vm1770_vm1, %v1399_v30  ;;  %v1835_v62 = vmul.f32 %v1761_v18, %v378_v46  ;;  %v1838_v63 = vmul.f32 %v1761_v18, %v371_v47  ;;  %v1848_v3 = vmul.f32 %v1761_v18, %v379_v51  ;;  %v415_v47 = vld [vmem:[%s1730_s13 + $0x70] sm:$0xff] }
  0x5e   : > { %728 = vperm.xlu1 %1518, %v696_v31   ;;  %718 = vperm.xlu0 %1517, %v694_v32   ;;  %v1851_v4 = vmul.f32 %v1761_v18, %v372_v52  ;;  %v1854_v5 = vmul.f32 %v1761_v18, %v380_v53  ;;  %v1863_v9 = vmul.f32 %v1761_v18, %v373_v57 }
  0x5f   : > { %v1866_v10 = vmul.f32 %v1761_v18, %v381_v58  ;;  %v1869_v11 = vmul.f32 %v1761_v18, %v374_v59  ;;  %v1872_v12 = vmul.f32 %v1761_v18, %v382_v0  ;;  %v424_v13 = vmul.f32 %v1749_v7, %v407_v1 }
  0x60   : > { %v425_v14 = vmul.f32 %v1749_v7, %v408_v2  ;;  %v702_v16 = vmul.f32 %v1757_v15, %v685_v6  ;;  %v701_v17 = vmul.f32 %v1757_v15, %v684_v8  ;;  %v704_v18 = vmul.f32 %v1757_v15, %v687_v19 }
  0x61   : > { %v703_v24 = vmul.f32 %v1757_v15, %v686_v21  ;;  %v426_v29 = vmul.f32 %v1749_v7, %v409_v25  ;;  %v706_v31 = vmul.f32 %v1757_v15, %v689_v27  ;;  %v705_v32 = vmul.f32 %v1757_v15, %v688_v28 }
  0x62   : > { %738 = vperm.xlu1 %1518, %v698_v43   ;;  %733 = vperm.xlu0 %1517, %v697_v44   ;;  %v1411_v23 = vpack.c.bf16 %v425_v14, %v424_v13  ;;  %v708_v36 = vmul.f32 %v1757_v15, %v691_v33  ;;  %v707_v37 = vmul.f32 %v1757_v15, %v690_v34  ;;  %v413_v15 = vld [vmem:[%s1730_s13 + $0x60] sm:$0xff]  ;;  %v414_v43 = vld [vmem:[%s1730_s13 + $0x68] sm:$0xff] }
  0x63   : > { %v428_v40 = vmul.f32 %v1749_v7, %v411_v38  ;;  %v429_v41 = vmul.f32 %v1749_v7, %v412_v39  ;;  %v430_v44 = vmul.f32 %v1749_v7, %v413_v15  ;;  %v431_v45 = vmul.f32 %v1749_v7, %v414_v43 }
  0x64   : > { %1404 = vmatpush3.bf16.xpose.msk.msra.mxu0 %vm1770_vm1, %v1399_v30  ;;  %1450 = vmatpush3.bf16.xpose.msk.msra.mxu1 %vm1770_vm1, %v1399_v30  ;;  %v427_v30 = vmul.f32 %v1749_v7, %v410_v26  ;;  %v432_v51 = vmul.f32 %v1749_v7, %v415_v47 }
  0x65   : > { %1407 = vmatprep.subr.msk.bf16.mxu0 %vm1770_vm1, %v1405_v48  ;;  %1443 = vmatprep.subr.msk.bf16.mxu1 %vm1770_vm1, %v1405_v48  ;;  %v1423_v42 = vpack.c.bf16 %v429_v41, %v428_v40  ;;  %v1429_v46 = vpack.c.bf16 %v431_v45, %v430_v44 }
  0x66   : > { %748 = vperm.xlu1 %1518, %v700_v54   ;;  %743 = vperm.xlu0 %1517, %v699_v60   ;;  %v1417_v35 = vpack.c.bf16 %v427_v30, %v426_v29  ;;  %v792_v60 = vlaneseq }
  0x68   : > { %v2002_v40 = vand.u32 127, %v792_v60 }
  0x6a   : > { %758 = vperm.xlu1 %1518, %v702_v16   ;;  %753 = vperm.xlu0 %1517, %v701_v17  }
  0x6c   : > { %1410 = vmatpush3.bf16.xpose.msk.msra.mxu0 %vm1770_vm1, %v1405_v48  ;;  %1451 = vmatpush3.bf16.xpose.msk.msra.mxu1 %vm1770_vm1, %v1405_v48  ;;  %v416_v48 = vld [vmem:[%s1730_s13 + $0x78] sm:$0xff]  ;;  %s1304_s13 = sshll.u32 %s1623_s23, 11 }
  0x6d   : > { %1413 = vmatprep.subr.msk.bf16.mxu0 %vm1770_vm1, %v1411_v23  ;;  %1444 = vmatprep.subr.msk.bf16.mxu1 %vm1770_vm1, %v1411_v23  ;;  %v433_v52 = vmul.f32 %v1749_v7, %v416_v48  ;;  %s2284_s23 = scalar_lea.hbm %s2344_s5, %s1304_s13 }
  0x6e   : > { %768 = vperm.xlu1 %1518, %v704_v18   ;;  %763 = vperm.xlu0 %1517, %v703_v24  }
  0x6f   : > { %v1435_v53 = vpack.c.bf16 %v433_v52, %v432_v51 }
  0x72   : > { %778 = vperm.xlu1 %1518, %v706_v31   ;;  %773 = vperm.xlu0 %1517, %v705_v32  }
  0x74   : > { %1416 = vmatpush3.bf16.xpose.msk.msra.mxu0 %vm1770_vm1, %v1411_v23  ;;  %1452 = vmatpush3.bf16.xpose.msk.msra.mxu1 %vm1770_vm1, %v1411_v23 }
  0x75   : > { %1419 = vmatprep.subr.msk.bf16.mxu0 %vm1770_vm1, %v1417_v35  ;;  %1445 = vmatprep.subr.msk.bf16.mxu1 %vm1770_vm1, %v1417_v35 }
  0x76   : > { %788 = vperm.xlu1 %1518, %v708_v36   ;;  %783 = vperm.xlu0 %1517, %v707_v37  }
  0x7c   : > { %1422 = vmatpush3.bf16.xpose.msk.msra.mxu0 %vm1770_vm1, %v1417_v35  ;;  %1453 = vmatpush3.bf16.xpose.msk.msra.mxu1 %vm1770_vm1, %v1417_v35 }
  0x7d   : > { %1425 = vmatprep.subr.msk.bf16.mxu0 %vm1770_vm1, %v1423_v42  ;;  %1446 = vmatprep.subr.msk.bf16.mxu1 %vm1770_vm1, %v1423_v42 }
  0x84   : > { %1428 = vmatpush3.bf16.xpose.msk.msra.mxu0 %vm1770_vm1, %v1423_v42  ;;  %1454 = vmatpush3.bf16.xpose.msk.msra.mxu1 %vm1770_vm1, %v1423_v42 }
  0x85   : > { %1431 = vmatprep.subr.msk.bf16.mxu0 %vm1770_vm1, %v1429_v46  ;;  %1447 = vmatprep.subr.msk.bf16.mxu1 %vm1770_vm1, %v1429_v46 }
  0x8c   : > { %1434 = vmatpush3.bf16.xpose.msk.msra.mxu0 %vm1770_vm1, %v1429_v46  ;;  %1455 = vmatpush3.bf16.xpose.msk.msra.mxu1 %vm1770_vm1, %v1429_v46 }
  0x8d   : > { %1437 = vmatprep.subr.msk.bf16.mxu0 %vm1770_vm1, %v1435_v53  ;;  %1448 = vmatprep.subr.msk.bf16.mxu1 %vm1770_vm1, %v1435_v53 }
  0x94   : > { %1440 = vmatpush3.bf16.xpose.msk.msra.mxu0 %vm1770_vm1, %v1435_v53  ;;  %1456 = vmatpush3.bf16.xpose.msk.msra.mxu1 %vm1770_vm1, %v1435_v53 }
  0x9b   : > { %1370 = vmatmul.mubr.msk.f32.vlgmr.msra.gmra.mrb[0].mxu0 %vm434_vm0, %v1812_v49  ;;  %1382 = vmatmul.mubr.msk.f32.vlgmr.msra.gmra.mrb[0].mxu1 %vm434_vm0, %v1815_v50 }
  0x9c   : > { %1372 = vmatprep.mubr.msk.f32.mxu0 %vm434_vm0, %v1822_v55  ;;  %1384 = vmatprep.mubr.msk.f32.mxu1 %vm434_vm0, %v1825_v56 }
  0x9f   : > { %1373 = vmatmul.mubr.msk.f32.gmra.mrb[2].mxu0 %vm434_vm0, %v1832_v61  ;;  %1385 = vmatmul.mubr.msk.f32.gmra.mrb[2].mxu1 %vm434_vm0, %v1835_v62 }
  0xa0   : > { %1375 = vmatprep.mubr.msk.f32.mxu0 %vm434_vm0, %v1838_v63  ;;  %1387 = vmatprep.mubr.msk.f32.mxu1 %vm434_vm0, %v1848_v3  ;;  %v1978_v63 = vshrl.u32 %v792_v60, 7 }
  0xa2   : > { %v794_v0 = vsub.s32 0, %v1978_v63  ;;  %v2000_v39 = vadd.s32 8, %v1978_v63  ;;  %v2005_v41 = vadd.s32 72, %v1978_v63  ;;  %v2009_v43 = vadd.s32 64, %v1978_v63 }
  0xa3   : > { %1376 = vmatmul.mubr.msk.f32.gmra.mrb[4].mxu0 %vm434_vm0, %v1851_v4  ;;  %1388 = vmatmul.mubr.msk.f32.gmra.mrb[4].mxu1 %vm434_vm0, %v1854_v5  ;;  %v2012_v44 = vadd.s32 24, %v1978_v63  ;;  %v2015_v45 = vadd.s32 88, %v1978_v63  ;;  %v2019_v46 = vadd.s32 16, %v1978_v63  ;;  %v2022_v47 = vadd.s32 80, %v1978_v63 }
  0xa4   : > { %1378 = vmatprep.mubr.msk.f32.mxu0 %vm434_vm0, %v1863_v9  ;;  %1390 = vmatprep.mubr.msk.f32.mxu1 %vm434_vm0, %v1866_v10  ;;  %v795_v3 = vrot.slane %v1765_v20, %v794_v0  ;;  %v2025_v48 = vadd.s32 40, %v1978_v63  ;;  %v2029_v53 = vadd.s32 104, %v1978_v63  ;;  %vm1038_vm6 = vcmp.eq.s32.totalorder %v2000_v39, %v2002_v40 }
  0xa5   : > { %vm1046_vm8 = vcmp.eq.s32.totalorder %v2005_v41, %v2002_v40  ;;  %vm1037_vm11 = vcmp.eq.s32.totalorder %v1978_v63, %v2002_v40  ;;  %vm1045_vm13 = vcmp.eq.s32.totalorder %v2009_v43, %v2002_v40 }
  0xa7   : > { %1379 = vmatmul.mubr.msk.f32.gmra.mrb[6].mxu0 %vm434_vm0, %v1869_v11  ;;  %1391 = vmatmul.mubr.msk.f32.gmra.mrb[6].mxu1 %vm434_vm0, %v1872_v12 }
  0xd8   : > { %v724_v7 = vpop.permute.xlu1 %723  ;;  %v714_v22 = vpop.permute.xlu0 %713 }
  0xd9   : > { %v799_v4 = vadd.f32 %v795_v3, %v724_v7  ;;  %v797_v5 = vadd.f32 %v795_v3, %v714_v22  ;;  %v2032_v7 = vadd.s32 32, %v1978_v63  ;;  %v2035_v22 = vadd.s32 96, %v1978_v63 }
  0xdd   : > { %v729_v49 = vpop.permute.xlu1 %728  ;;  %v719_v50 = vpop.permute.xlu0 %718 }
  0xde   : > { %v798_v6 = vadd.f32 %v795_v3, %v719_v50  ;;  %v800_v11 = vadd.f32 %v795_v3, %v729_v49 }
  0xe1   : > { %v739_v54 = vpop.permute.xlu1 %738  ;;  %v734_v55 = vpop.permute.xlu0 %733 }
  0xe2   : > { %v802_v12 = vadd.f32 %v795_v3, %v739_v54  ;;  %v801_v13 = vadd.f32 %v795_v3, %v734_v55 }
  0xe5   : > { %v749_v56 = vpop.permute.xlu1 %748  ;;  %v744_v57 = vpop.permute.xlu0 %743 }
  0xe6   : > { %v1982_v19 = vadd.f32 %v795_v3, %v749_v56  ;;  %v1984_v21 = vadd.f32 %v795_v3, %v744_v57 }
  0xe9   : > { %v759_v58 = vpop.permute.xlu1 %758  ;;  %v754_v59 = vpop.permute.xlu0 %753 }
  0xea   : > { %v806_v8 = vadd.f32 %v795_v3, %v759_v58  ;;  %v805_v14 = vadd.f32 %v795_v3, %v754_v59 }
  0xed   : > { %v769_v61 = vpop.permute.xlu1 %768  ;;  %v764_v62 = vpop.permute.xlu0 %763 }
  0xee   : > { %v808_v25 = vadd.f32 %v795_v3, %v769_v61  ;;  %v807_v26 = vadd.f32 %v795_v3, %v764_v62 }
  0xf1   : > { %v779_v1 = vpop.permute.xlu1 %778  ;;  %v774_v2 = vpop.permute.xlu0 %773 }
  0xf2   : > { %v810_v29 = vadd.f32 %v795_v3, %v779_v1  ;;  %v809_v30 = vadd.f32 %v795_v3, %v774_v2 }
  0xf5   : > { %v789_v9 = vpop.permute.xlu1 %788  ;;  %v784_v10 = vpop.permute.xlu0 %783 }
  0xf6   : > { %v1990_v33 = vadd.f32 %v795_v3, %v789_v9  ;;  %v1992_v34 = vadd.f32 %v795_v3, %v784_v10 }
 0x16e   : > { %v1371_v16 = vpop.f32.mrb[0].mxu0  ;;  %v1383_v17 = vpop.f32.mrb[0].mxu1 }
 0x16f   : > { %v814_v23 = vadd.f32 %v1371_v16, %v798_v6  ;;  %v822_v18 = vadd.f32 %v1383_v17, %v806_v8  ;;  %v597_v24 = vpop.f32.mrb[1].mxu0  ;;  %v637_v20 = vpop.f32.mrb[1].mxu1 }
 0x170   : > { %v813_v27 = vadd.f32 %v797_v5, %v597_v24  ;;  %v821_v28 = vadd.f32 %v805_v14, %v637_v20 }
 0x171   : > { %v1986_v31 = vmax.f32 %v814_v23, 0.0  ;;  %v1988_v32 = vmax.f32 %v822_v18, 0.0 }
 0x172   : > { %v1994_v35 = vmax.f32 %v813_v27, 0.0  ;;  %v1996_v36 = vmax.f32 %v821_v28, 0.0  ;;  %v1374_v37 = vpop.f32.mrb[2].mxu0  ;;  %v1386_v38 = vpop.f32.mrb[2].mxu1 }
 0x173   : > { %1521 = vrsqrt.f32 %v1986_v31  ;;  %v607_v42 = vpop.f32.mrb[3].mxu0  ;;  %v647_v15 = vpop.f32.mrb[3].mxu1  ;;  %vm854_vm2 = vcmp.eq.f32.partialorder %v1986_v31, inf  ;;  %v816_v49 = vadd.f32 %v1374_v37, %v800_v11  ;;  %v824_v50 = vadd.f32 %v1386_v38, %v808_v25 }
 0x174   : > { %1523 = vrsqrt.f32 %v1988_v32  ;;  %v815_v54 = vadd.f32 %v799_v4, %v607_v42  ;;  %v823_v55 = vadd.f32 %v807_v26, %v647_v15  ;;  %vm856_vm3 = vcmp.eq.f32.partialorder %v1986_v31, 0.0 }
 0x175   : > { %1525 = vrsqrt.f32 %v1994_v35  ;;  %v2039_v62 = vmax.f32 %v816_v49, 0.0  ;;  %v2041_v0 = vmax.f32 %v824_v50, 0.0  ;;  %v857_v2 = vand.u32 2147483648, %v1986_v31 }
 0x176   : > { %1527 = vrsqrt.f32 %v1996_v36  ;;  %v1377_v51 = vpop.f32.mrb[4].mxu0  ;;  %v1389_v52 = vpop.f32.mrb[4].mxu1  ;;  %v2043_v1 = vmax.f32 %v815_v54, 0.0  ;;  %vm910_vm4 = vcmp.eq.f32.partialorder %v1988_v32, inf  ;;  %vm912_vm5 = vcmp.eq.f32.partialorder %v1988_v32, 0.0 }
 0x177   : > { %v617_v56 = vpop.f32.mrb[5].mxu0  ;;  %v657_v57 = vpop.f32.mrb[5].mxu1  ;;  %v818_v58 = vadd.f32 %v1377_v51, %v802_v12  ;;  %v826_v59 = vadd.f32 %v1389_v52, %v810_v29  ;;  %v2048_v3 = vmax.f32 %v823_v55, 0.0  ;;  %v913_v6 = vand.u32 2147483648, %v1988_v32 }
 0x178   : > { %v817_v60 = vadd.f32 %v801_v13, %v617_v56  ;;  %v825_v61 = vadd.f32 %v809_v30, %v657_v57  ;;  %vm847_vm7 = vcmp.eq.f32.partialorder %v1994_v35, inf  ;;  %1529 = vrsqrt.f32 %v2039_v62 }
 0x179   : > { %v2059_v8 = vmax.f32 %v818_v58, 0.0  ;;  %vm849_vm9 = vcmp.eq.f32.partialorder %v1994_v35, 0.0  ;;  %v850_v11 = vand.u32 2147483648, %v1994_v35  ;;  %vm903_vm10 = vcmp.eq.f32.partialorder %v1996_v36, inf }
 0x17a   : > { %v2050_v4 = vpop.f32.mrb[6].mxu0  ;;  %v2052_v5 = vpop.f32.mrb[6].mxu1  ;;  %1531 = vrsqrt.f32 %v2041_v0  ;;  %vm905_vm12 = vcmp.eq.f32.partialorder %v1996_v36, 0.0  ;;  %v906_v13 = vand.u32 2147483648, %v1996_v36  ;;  %v2076_v14 = vmax.f32 %v826_v59, 0.0 }
 0x17b   : > { %v2061_v9 = vpop.f32.mrb[7].mxu0  ;;  %v2063_v10 = vpop.f32.mrb[7].mxu1  ;;  %1533 = vrsqrt.f32 %v2043_v1  ;;  %v2083_v23 = vmax.f32 %v817_v60, 0.0  ;;  %v2085_v18 = vmax.f32 %v825_v61, 0.0  ;;  %vm868_vm14 = vcmp.eq.f32.partialorder %v2039_v62, inf }
 0x17c   : > { %1535 = vrsqrt.f32 %v2048_v3  ;;  %v871_v25 = vand.u32 2147483648, %v2039_v62  ;;  %vm870_vm15 = vcmp.eq.f32.partialorder %v2039_v62, 0.0  ;;  %vm924_vm0 = vcmp.eq.f32.partialorder %v2041_v0, inf }
 0x17d   : > { %v1522_v12 = vpop.eup %1521  ;;  %1537 = vrsqrt.f32 %v2059_v8  ;;  %v927_v29 = vand.u32 2147483648, %v2041_v0  ;;  %v864_v30 = vand.u32 2147483648, %v2043_v1  ;;  %vm926_vm1 = vcmp.eq.f32.partialorder %v2041_v0, 0.0 }
 0x17e   : > { %v1524_v16 = vpop.eup %1523  ;;  %v853_v17 = vmul.f32 %v1522_v12, %v1986_v31  ;;  %1539 = vrsqrt.f32 %v2076_v14  ;;  %v920_v52 = vand.u32 2147483648, %v2048_v3  ;;  %v885_v59 = vand.u32 2147483648, %v2059_v8 }
 0x17f   : > { %v1526_v24 = vpop.eup %1525  ;;  %v909_v20 = vmul.f32 %v1524_v16, %v1988_v32  ;;  %1541 = vrsqrt.f32 %v2083_v23 }
 0x180   : > { %v1528_v26 = vpop.eup %1527  ;;  %v855_v27 = vsel %vm854_vm2, %v1986_v31, %v853_v17  ;;  %v846_v28 = vmul.f32 %v1526_v24, %v1994_v35  ;;  %vm919_vm2 = vcmp.eq.f32.partialorder %v2048_v3, 0.0  ;;  %1543 = vrsqrt.f32 %v2085_v18 }
 0x181   : > { %v858_v37 = vsel %vm856_vm3, %v857_v2, %v855_v27  ;;  %v911_v38 = vsel %vm910_vm4, %v1988_v32, %v909_v20  ;;  %v902_v42 = vmul.f32 %v1528_v26, %v1996_v36  ;;  %vm863_vm3 = vcmp.eq.f32.partialorder %v2043_v1, 0.0 }
 0x182   : > { %v958_v15 = vsub.f32 1.0, %v858_v37  ;;  %v914_v51 = vsel %vm912_vm5, %v913_v6, %v911_v38  ;;  %v848_v31 = vsel %vm847_vm7, %v1994_v35, %v846_v28  ;;  %vm1040_vm5 = vcmp.eq.s32.totalorder %v2012_v44, %v2002_v40  ;;  %v1530_v35 = vpop.eup %1529 }
 0x183   : > { %v966_v49 = vsub.f32 1.0, %v914_v51  ;;  %v851_v50 = vsel %vm849_vm9, %v850_v11, %v848_v31  ;;  %v904_v54 = vsel %vm903_vm10, %v1996_v36, %v902_v42  ;;  %vm882_vm7 = vcmp.eq.f32.partialorder %v2059_v8, inf }
 0x184   : > { %v974_v32 = vmax.f32 %v958_v15, 0.0  ;;  %v957_v55 = vsub.f32 1.0, %v851_v50  ;;  %v907_v56 = vsel %vm905_vm12, %v906_v13, %v904_v54  ;;  %vm884_vm4 = vcmp.eq.f32.partialorder %v2059_v8, 0.0  ;;  %v1532_v60 = vpop.eup %1531 }
 0x185   : > { %v982_v57 = vmax.f32 %v966_v49, 0.0  ;;  %v965_v58 = vsub.f32 1.0, %v907_v56  ;;  %vm1039_vm10 = vcmp.eq.s32.totalorder %v2019_v46, %v2002_v40  ;;  %v867_v2 = vmul.f32 %v1530_v35, %v2039_v62  ;;  %v1534_v6 = vpop.eup %1533 }
 0x186   : > { %v1054_v36 = vsel %vm1038_vm6, 1.0, %v974_v32  ;;  %v973_v61 = vmax.f32 %v957_v55, 0.0  ;;  %vm938_vm9 = vcmp.eq.f32.partialorder %v2076_v14, inf  ;;  %v923_v12 = vmul.f32 %v1532_v60, %v2041_v0  ;;  %v1536_v16 = vpop.eup %1535 }
 0x187   : > { %1070 = vst [vmem:[%s2146_s12 + $0x8] sm:$0xff] %v1054_v36  ;;  %v1062_v39 = vsel %vm1046_vm8, 1.0, %v982_v57  ;;  %v981_v11 = vmax.f32 %v965_v58, 0.0  ;;  %vm1042_vm6 = vcmp.eq.s32.totalorder %v2025_v48, %v2002_v40  ;;  %vm940_vm12 = vcmp.eq.f32.partialorder %v2076_v14, 0.0  ;;  %v1538_v20 = vpop.eup %1537 }
 0x188   : > { %v941_v13 = vand.u32 2147483648, %v2076_v14  ;;  %1078 = vst [vmem:[%s2146_s12 + $0x48] sm:$0xff] %v1062_v39  ;;  %v1053_v17 = vsel %vm1037_vm11, 1.0, %v973_v61  ;;  %v869_v41 = vsel %vm868_vm14, %v2039_v62, %v867_v2  ;;  %v860_v24 = vmul.f32 %v1534_v6, %v2043_v1  ;;  %v1540_v42 = vpop.eup %1539 }
 0x189   : > { %1069 = vst [vmem:[%s2146_s12] sm:$0xff] %v1053_v17  ;;  %v1061_v26 = vsel %vm1045_vm13, 1.0, %v981_v11  ;;  %v872_v27 = vsel %vm870_vm15, %v871_v25, %v869_v41  ;;  %v925_v28 = vsel %vm924_vm0, %v2041_v0, %v923_v12  ;;  %v916_v37 = vmul.f32 %v1536_v16, %v2048_v3  ;;  %v1542_v35 = vpop.eup %1541 }
 0x18a   : > { %vm875_vm8 = vcmp.eq.f32.partialorder %v2083_v23, inf  ;;  %1077 = vst [vmem:[%s2146_s12 + $0x40] sm:$0xff] %v1061_v26  ;;  %v960_v38 = vsub.f32 1.0, %v872_v27  ;;  %v928_v43 = vsel %vm926_vm1, %v927_v29, %v925_v28  ;;  %vm2349_vm11 = vcmp.eq.f32.partialorder %v2043_v1, inf  ;;  %v1544_v6 = vpop.eup %1543 }
 0x18b   : > { %v862_v62 = vsel %vm2349_vm11, %v2043_v1, %v860_v24  ;;  %v881_v25 = vmul.f32 %v1538_v20, %v2059_v8  ;;  %vm1050_vm13 = vcmp.eq.s32.totalorder %v2029_v53, %v2002_v40  ;;  %vm877_vm14 = vcmp.eq.f32.partialorder %v2083_v23, 0.0 }
 0x18c   : > { %v968_v15 = vsub.f32 1.0, %v928_v43  ;;  %v865_v51 = vsel %vm863_vm3, %v864_v30, %v862_v62  ;;  %vm2350_vm15 = vcmp.eq.f32.partialorder %v2048_v3, inf  ;;  %v878_v29 = vand.u32 2147483648, %v2083_v23 }
 0x18d   : > { %v918_v0 = vsel %vm2350_vm15, %v2048_v3, %v916_v37  ;;  %v976_v31 = vmax.f32 %v960_v38, 0.0  ;;  %v959_v49 = vsub.f32 1.0, %v865_v51  ;;  %v883_v54 = vsel %vm882_vm7, %v2059_v8, %v881_v25 }
 0x18e   : > { %v921_v50 = vsel %vm919_vm2, %v920_v52, %v918_v0  ;;  %v984_v32 = vmax.f32 %v968_v15, 0.0  ;;  %v886_v30 = vsel %vm884_vm4, %v885_v59, %v883_v54  ;;  %v937_v55 = vmul.f32 %v1540_v42, %v2076_v14 }
 0x18f   : > { %v967_v1 = vsub.f32 1.0, %v921_v50  ;;  %vm1041_vm0 = vcmp.eq.s32.totalorder %v2032_v7, %v2002_v40  ;;  %v1056_v3 = vsel %vm1040_vm5, 1.0, %v976_v31  ;;  %v975_v52 = vmax.f32 %v959_v49, 0.0 }
 0x190   : > { %v962_v56 = vsub.f32 1.0, %v886_v30  ;;  %vm931_vm1 = vcmp.eq.f32.partialorder %v2085_v18, inf  ;;  %1072 = vst [vmem:[%s2146_s12 + $0x18] sm:$0xff] %v1056_v3  ;;  %vm2351_vm2 = vcmp.eq.s32.totalorder %v2015_v45, %v2002_v40  ;;  %v939_v58 = vsel %vm938_vm9, %v2076_v14, %v937_v55 }
 0x191   : > { %v1064_v8 = vsel %vm2351_vm2, 1.0, %v984_v32  ;;  %v983_v57 = vmax.f32 %v967_v1, 0.0  ;;  %vm933_vm3 = vcmp.eq.f32.partialorder %v2085_v18, 0.0  ;;  %v1055_v44 = vsel %vm1039_vm10, 1.0, %v975_v52 }
 0x192   : > { %1080 = vst [vmem:[%s2146_s12 + $0x58] sm:$0xff] %v1064_v8  ;;  %v978_v59 = vmax.f32 %v962_v56, 0.0  ;;  %v942_v60 = vsel %vm940_vm12, %v941_v13, %v939_v58  ;;  %v874_v45 = vmul.f32 %v1542_v35, %v2083_v23  ;;  %1071 = vst [vmem:[%s2146_s12 + $0x10] sm:$0xff] %v1055_v44  ;;  %vm2352_vm4 = vcmp.eq.s32.totalorder %v2022_v47, %v2002_v40 }
 0x193   : > { %v1063_v36 = vsel %vm2352_vm4, 1.0, %v983_v57  ;;  %v970_v61 = vsub.f32 1.0, %v942_v60  ;;  %v820_v2 = vadd.f32 %v2050_v4, %v1982_v19  ;;  %v828_v46 = vadd.f32 %v2052_v5, %v1990_v33 }
 0x194   : > { %1079 = vst [vmem:[%s2146_s12 + $0x50] sm:$0xff] %v1063_v36  ;;  %v1058_v14 = vsel %vm1042_vm6, 1.0, %v978_v59  ;;  %v876_v39 = vsel %vm875_vm8, %v2083_v23, %v874_v45  ;;  %v819_v47 = vadd.f32 %v1984_v21, %v2061_v9  ;;  %v827_v19 = vadd.f32 %v1992_v34, %v2063_v10 }
 0x195   : > { %1074 = vst [vmem:[%s2146_s12 + $0x28] sm:$0xff] %v1058_v14  ;;  %v986_v4 = vmax.f32 %v970_v61, 0.0  ;;  %v879_v33 = vsel %vm877_vm14, %v878_v29, %v876_v39  ;;  %v930_v5 = vmul.f32 %v1544_v6, %v2085_v18  ;;  %v836_v48 = vmax.f32 %v820_v2, 0.0 }
 0x196   : > { %v961_v11 = vsub.f32 1.0, %v879_v33  ;;  %v934_v12 = vand.u32 2147483648, %v2085_v18  ;;  %v844_v13 = vmax.f32 %v828_v46, 0.0  ;;  %v835_v16 = vmax.f32 %v819_v47, 0.0 }
 0x197   : > { %v1066_v21 = vsel %vm1050_vm13, 1.0, %v986_v4  ;;  %v932_v34 = vsel %vm931_vm1, %v2085_v18, %v930_v5  ;;  %1545 = vrsqrt.f32 %v836_v48  ;;  %v843_v9 = vmax.f32 %v827_v19, 0.0 }
 0x198   : > { %1082 = vst [vmem:[%s2146_s12 + $0x68] sm:$0xff] %v1066_v21  ;;  %v977_v10 = vmax.f32 %v961_v11, 0.0  ;;  %v935_v23 = vsel %vm933_vm3, %v934_v12, %v932_v34  ;;  %1547 = vrsqrt.f32 %v844_v13  ;;  %vm1049_vm5 = vcmp.eq.s32.totalorder %v2035_v22, %v2002_v40 }
 0x199   : > { %v969_v17 = vsub.f32 1.0, %v935_v23  ;;  %1549 = vrsqrt.f32 %v835_v16  ;;  %v1007_v20 = vadd.s32 56, %v1978_v63  ;;  %v1015_v18 = vadd.s32 120, %v1978_v63 }
 0x19a   : > { %v1057_v41 = vsel %vm1041_vm0, 1.0, %v977_v10  ;;  %1551 = vrsqrt.f32 %v843_v9  ;;  %vm896_vm9 = vcmp.eq.f32.partialorder %v836_v48, inf  ;;  %v1006_v7 = vadd.s32 48, %v1978_v63 }
 0x19b   : > { %1073 = vst [vmem:[%s2146_s12 + $0x20] sm:$0xff] %v1057_v41  ;;  %v985_v53 = vmax.f32 %v969_v17, 0.0  ;;  %vm1044_vm7 = vcmp.eq.s32.totalorder %v1007_v20, %v2002_v40  ;;  %v1014_v28 = vadd.s32 112, %v1978_v63  ;;  %vm898_vm10 = vcmp.eq.f32.partialorder %v836_v48, 0.0 }
 0x19c   : > { %v899_v37 = vand.u32 2147483648, %v836_v48  ;;  %vm952_vm12 = vcmp.eq.f32.partialorder %v844_v13, inf  ;;  %vm954_vm6 = vcmp.eq.f32.partialorder %v844_v13, 0.0  ;;  %v955_v25 = vand.u32 2147483648, %v844_v13 }
 0x19d   : > { %v1065_v24 = vsel %vm1049_vm5, 1.0, %v985_v53  ;;  %vm889_vm8 = vcmp.eq.f32.partialorder %v835_v16, inf  ;;  %vm891_vm11 = vcmp.eq.f32.partialorder %v835_v16, 0.0  ;;  %v892_v0 = vand.u32 2147483648, %v835_v16 }
 0x19e   : > { %1081 = vst [vmem:[%s2146_s12 + $0x60] sm:$0xff] %v1065_v24  ;;  %vm945_vm13 = vcmp.eq.f32.partialorder %v843_v9, inf  ;;  %vm947_vm14 = vcmp.eq.f32.partialorder %v843_v9, 0.0  ;;  %v948_v54 = vand.u32 2147483648, %v843_v9  ;;  %vm1052_vm15 = vcmp.eq.s32.totalorder %v1015_v18, %v2002_v40 }
 0x19f   : > { %vm1043_vm0 = vcmp.eq.s32.totalorder %v1006_v7, %v2002_v40  ;;  %vm1051_vm1 = vcmp.eq.s32.totalorder %v1014_v28, %v2002_v40 }
 0x1a1   : > { %v1546_v26 = vpop.eup %1545 }
 0x1a2   : > { %v895_v27 = vmul.f32 %v1546_v26, %v836_v48  ;;  %v1548_v22 = vpop.eup %1547 }
 0x1a3   : > { %v1550_v38 = vpop.eup %1549  ;;  %v951_v62 = vmul.f32 %v1548_v22, %v844_v13 }
 0x1a4   : > { %v897_v43 = vsel %vm896_vm9, %v836_v48, %v895_v27  ;;  %v1552_v42 = vpop.eup %1551  ;;  %v888_v51 = vmul.f32 %v1550_v38, %v835_v16 }
 0x1a5   : > { %v900_v15 = vsel %vm898_vm10, %v899_v37, %v897_v43  ;;  %v953_v31 = vsel %vm952_vm12, %v844_v13, %v951_v62  ;;  %v944_v63 = vmul.f32 %v1552_v42, %v843_v9 }
 0x1a6   : > { %v964_v29 = vsub.f32 1.0, %v900_v15  ;;  %v956_v49 = vsel %vm954_vm6, %v955_v25, %v953_v31  ;;  %v890_v50 = vsel %vm889_vm8, %v835_v16, %v888_v51 }
 0x1a7   : > { %v972_v1 = vsub.f32 1.0, %v956_v49  ;;  %v893_v30 = vsel %vm891_vm11, %v892_v0, %v890_v50  ;;  %v946_v55 = vsel %vm945_vm13, %v843_v9, %v944_v63 }
 0x1a8   : > { %v980_v32 = vmax.f32 %v964_v29, 0.0  ;;  %v963_v3 = vsub.f32 1.0, %v893_v30  ;;  %v949_v52 = vsel %vm947_vm14, %v948_v54, %v946_v55 }
 0x1a9   : > { %v988_v35 = vmax.f32 %v972_v1, 0.0  ;;  %v971_v8 = vsub.f32 1.0, %v949_v52 }
 0x1aa   : > { %v1060_v56 = vsel %vm1044_vm7, 1.0, %v980_v32  ;;  %v979_v57 = vmax.f32 %v963_v3, 0.0 }
 0x1ab   : > { %1076 = vst [vmem:[%s2146_s12 + $0x38] sm:$0xff] %v1060_v56  ;;  %v1068_v58 = vsel %vm1052_vm15, 1.0, %v988_v35  ;;  %v987_v44 = vmax.f32 %v971_v8, 0.0 }
 0x1ac   : > { %1084 = vst [vmem:[%s2146_s12 + $0x78] sm:$0xff] %v1068_v58  ;;  %v1059_v59 = vsel %vm1043_vm0, 1.0, %v979_v57 }
 0x1ad   : > { %1075 = vst [vmem:[%s2146_s12 + $0x30] sm:$0xff] %v1059_v59  ;;  %v1067_v60 = vsel %vm1051_vm1, 1.0, %v987_v44 }
 0x1ae   : > { %1083 = vst [vmem:[%s2146_s12 + $0x70] sm:$0xff] %v1067_v60 }
 0x1af   : > { %1566 = shalt.err (!%p1563_p5)
}
 0x1b0   : > { %s1567_s28 = scalar_lea.hbm %s2284_s23, 2048  ;;  %s1571_s9 = scalar_lea.hbm %s2344_s5, 4096 }
 0x1b1   : > { %p1568_p6 = scmp.ne.s32.totalorder %s2284_s23, %s1567_s28  ;;  %p1572_p10 = scmp.lt.u32.totalorder %s2284_s23, %s2344_s5 }
 0x1b2   : > { %p1573_p11 = scmp.lt.u32.totalorder %s1571_s9, %s1567_s28  ;;  %p1575_p13 = scmp.lt.u32.totalorder %s1567_s28, %s2284_s23 }
 0x1b3   : > { %p1569_p7 = pnand %p1568_p6, %p1710_p4 }
 0x1b4   : > { %p1574_p12 = por %p1573_p11, %p1572_p10 }
 0x1b5   : > { %p1570_p9 = pneg %p1569_p7 }
 0x1b6   : > { %p1576_p0 = por %p1575_p13, %p1574_p12 }
 0x1b8   : > { %p1577_p1 = pnand %p1576_p0, %p1570_p9 }
 0x1ba   : > { %1580 = shalt.err (!%p1577_p1)
}
 0x1bb   : > { %s1635_s12 = smov 128   ;;  %s1636_s13 = smov 8  }
 0x1bc   : > { %1459 = dma.vmem_to_hbm [thread:$0]  (%p1710_p4), %s2286_s14, 2048, %s2284_s23, %s2293_s17, %s1635_s12, %s1635_s12, %s1636_s13  }
 0x1bd PF: > { %p1465_p2 = scmp.ge.s32.totalorder %s1631_s25, 2  ;;  %s1136_s15 = sand.u32 1, %s1611_s20  }
 0x1be   : > { %s1137_s16 = scalar_lea.sflag [#allocation4], %s1136_s15 }
 0x1bf   : > { %p1462_p3 = pnand %p1465_p2, %p1717_p8 }
 0x1c1   : > { %1606 = dma.done.wait (!%p1462_p3), %s1137_s16, 2048  }
 0x1c2   : > { %1608 = vsyncadd (!%p1462_p3), %s1137_s16, 4294965248  ;;  %s19_s25 = sadd.s32 1, %s1631_s25   ;;  %s2353_s20 = smov %s1615_s21 }
 0x1c3   : > { %p16_p5 = scmp.ge.s32.totalorder %s19_s25, 4   ;;  %s2354_s21 = smov %s1619_s22 }
 0x1c4   : > { %s2355_s22 = smov %s1723_s7  ;;  %s2356_s23 = smov %s1627_s24 }
 0x1c5   : > { %s2357_s24 = smov %s2359_s27  ;;  %18 = sbr.rel (!%p16_p5) target bundleno = 6 (0x6), region = 92 }
 0x1cc   :  { %1142 = vsyncpa [#allocation4], 1 }
 0x1cd   :  { %1144 = vsyncpa [#allocation4 + $0x1], 1 }

</bundles_post_ra>
